<compile_context>
chip_gen: v5e
topology: v5e:2x2
jax: 0.10.0
libtpu: 0.0.40
codegen_flags: <defaults>
</compile_context>

<pallas_src>
import jax
import jax.numpy as jnp
from jax import lax
from jax.experimental import pallas as pl
from jax.experimental.pallas import tpu as pltpu


def _round_up(x, m):
    return ((x + m - 1) // m) * m


def _resident_spec(block_shape, index_map, single_buffer):
    """BlockSpec for an input whose block index never changes.

    With single_buffer=True we ask the pipeliner for a single VMEM buffer
    (double-buffering a constant-index block just wastes VMEM)."""
    if single_buffer:
        try:
            return pl.BlockSpec(block_shape, index_map,
                                pipeline_mode=pl.Buffered(1))
        except TypeError:  # jax version without the pipeline_mode kwarg
            pass
    return pl.BlockSpec(block_shape, index_map)


def _tile_loss(anchor_ref, contrastT_ref, same_class):
    """Sum over this tile's valid anchor rows of mean_log_prob_pos.

    anchor_ref:    [TQ, Dp] bf16 L2-normalized anchor rows (tail rows are zero pad)
    contrastT_ref: [Dp, B]  bf16 L2-normalized contrast features, pre-transposed
    same_class:    [TQ, B]  bool, True where (row, col) share a class
    """
    TQ = anchor_ref.shape[0]
    B = contrastT_ref.shape[1]
    row_off = pl.program_id(0) * TQ

    # bf16 MXU matmul: [TQ, Dp] @ [Dp, B] -> f32 [TQ, B] cosine similarities.
    adc = lax.dot_general(
        anchor_ref[...], contrastT_ref[...],
        dimension_numbers=(((1,), (0,)), ((), ())),
        preferred_element_type=jnp.float32)

    # Reference: adc/T, subtract row-max, then row-wise min-max normalize. Both
    # the /T and the row-max shift cancel under the min-max normalization,
    # leaving (adc - rowmin) / (rowmax - rowmin): only 2 row reductions needed.
    rmax = jnp.max(adc, axis=1, keepdims=True)                    # [TQ, 1]
    rmin = jnp.min(adc, axis=1, keepdims=True)                    # [TQ, 1]

    row_ids = lax.broadcasted_iota(jnp.int32, (TQ, 1), 0) + row_off
    row_valid = row_ids < B                                       # padded tail rows
    rng = jnp.where(row_valid, rmax - rmin, 1.0)                  # keep pads finite
    logits = (adc - rmin) * (1.0 / rng)                           # values in [0, 1]

    # logits_mask: exclude self-contrast on the *global* diagonal (kept boolean).
    rows_g = lax.broadcasted_iota(jnp.int32, (TQ, B), 0) + row_off
    cols = lax.broadcasted_iota(jnp.int32, (TQ, B), 1)
    not_diag = rows_g != cols
    pos = jnp.logical_and(same_class, not_diag)

    exp_sum = jnp.sum(jnp.where(not_diag, jnp.exp(logits), 0.0),
                      axis=1, keepdims=True)
    log_prob = logits - jnp.log(exp_sum)

    num = jnp.sum(jnp.where(pos, log_prob, 0.0), axis=1, keepdims=True)
    den = jnp.sum(jnp.where(pos, 1.0, 0.0), axis=1, keepdims=True) + 1.0
    m = num / den                                                 # [TQ, 1], "+1" as in ref
    return jnp.sum(jnp.where(row_valid, m, 0.0))


def _supcon_labels_kernel(af_ref, ctT_ref, lrow_ref, lcol_ref, out_ref):
    # Build the positive mask in-kernel from labels: [TQ,1] == [1,B] -> [TQ,B] bool.
    same = lrow_ref[...] == lcol_ref[...]
    partial = _tile_loss(af_ref, ctT_ref, same)
    out_ref[...] = jnp.full(out_ref.shape, partial, dtype=jnp.float32)


def _supcon_mask_kernel(af_ref, ctT_ref, mask_ref, out_ref):
    same = mask_ref[...] != 0                                     # int8 -> bool
    partial = _tile_loss(af_ref, ctT_ref, same)
    out_ref[...] = jnp.full(out_ref.shape, partial, dtype=jnp.float32)


def _choose_tiling(B, Dp, mask_path):
    """Pick anchor tile height TQ and the scoped-VMEM limit per TPU generation."""
    kind = ""
    try:
        kind = jax.devices()[0].device_kind.lower()
    except Exception:
        pass
    big_vmem = ("v5" in kind) or ("v6" in kind)      # 128 MiB VMEM per TensorCore
    two_core = "v7" in kind                          # 2 TCs share the parallel axis

    budget = (92 << 20) if big_vmem else (52 << 20)        # working budget w/ headroom
    vmem_limit = (100 << 20) if big_vmem else (56 << 20)   # scoped-VMEM limit
    align = 128 if "v5" in kind else 256                   # MXU-friendly tile heights
    desired = 512 if big_vmem else 256

    # VMEM accounting (bytes): resident bf16 (Dp, B) contrast (single-buffered) +
    # double-buffered bf16 (TQ, Dp) anchor + ~6 live f32 [TQ, B] intermediates
    # (+ double-buffered int8 mask tile on the explicit-mask path).
    avail = budget - B * Dp * 2
    per_row = 2 * Dp * 2 + 6 * B * 4 + (2 * B if mask_path else 0)
    cap = max(8, avail // per_row) if avail > 0 else 8

    tq = int(min(desired, cap))
    if B <= tq:
        if two_core and B > 16:
            tq = _round_up(pl.cdiv(B, 2), 8)   # >=2 grid steps so both TCs get work
        else:
            tq = _round_up(B, 8)
    elif tq >= align:
        tq = (tq // align) * align
    else:
        tq = max(8, (tq // 8) * 8)
    return int(tq), int(vmem_limit)


def supcon_loss(features, labels=None, mask=None, *,
                temperature=0.1, base_temperature=0.07):
    """JAX/Pallas equivalent of SupConLoss(args).forward(features, labels, mask)."""
    features = jnp.asarray(features)
    if features.ndim != 2:
        # TODO(synk): >2-D features (views axis) / contrast_mode='all' not supported.
        raise ValueError("only 2-D features [B, D] are supported by this kernel")
    if labels is not None and mask is not None:
        raise ValueError("Cannot define both `labels` and `mask`")
    B, D = features.shape

    # F.normalize(dim=-1) + bf16 cast done ONCE here (not per grid step):
    # x / max(||x||, 1e-12) == x * rsqrt(max(||x||^2, 1e-24)).
    x = features.astype(jnp.float32)
    x = x * lax.rsqrt(jnp.maximum(jnp.sum(x * x, axis=-1, keepdims=True), 1e-24))
    Dp = _round_up(D, 128)                  # lane-dense loads / full MXU K-slices
    if Dp != D:
        x = jnp.pad(x, ((0, 0), (0, Dp - D)))
    xb = x.astype(jnp.bfloat16)
    contrastT = xb.T                        # (Dp, B), VMEM-resident across tiles

    TQ, vmem_limit = _choose_tiling(B, Dp, mask_path=mask is not None)
    num_tiles = pl.cdiv(B, TQ)
    Bp = num_tiles * TQ
    anchor = xb if Bp == B else jnp.pad(xb, ((0, Bp - B), (0, 0)))

    out_shape = jax.ShapeDtypeStruct((num_tiles, 8, 128), jnp.float32)
    out_spec = pl.BlockSpec((1, 8, 128), lambda i: (i, 0, 0))
    anchor_spec = pl.BlockSpec((TQ, Dp), lambda i: (i, 0))
    cparams = pltpu.CompilerParams(
        dimension_semantics=("parallel",),
        vmem_limit_bytes=vmem_limit)

    # Per-path small operands.
    labels_row = labels_col = mask_i8 = None
    if mask is None:
        if labels is None:
            # SimCLR-degenerate path: mask == eye  <=>  labels == arange(B).
            labels = jnp.arange(B, dtype=jnp.int32)
        else:
            labels = jnp.asarray(labels).reshape(-1).astype(jnp.int32)
            if labels.shape[0] != B:
                raise ValueError("Num of labels does not match num of features")
        labels_row = labels if Bp == B else jnp.pad(labels, (0, Bp - B),
                                                    constant_values=-1)
        labels_row = labels_row.reshape(Bp, 1)
        labels_col = labels.reshape(1, B)
    else:
        # TODO(synk): non-binary (weighted) float masks are treated as binary here.
        mask_i8 = (jnp.asarray(mask) != 0).astype(jnp.int8)
        if Bp != B:
            mask_i8 = jnp.pad(mask_i8, ((0, Bp - B), (0, 0)))

    def _call(single_buffer):
        contrast_spec = _resident_spec((Dp, B), lambda i: (0, 0), single_buffer)
        if mask is None:
            in_specs = [anchor_spec, contrast_spec,
                        pl.BlockSpec((TQ, 1), lambda i: (i, 0)),
                        _resident_spec((1, B), lambda i: (0, 0), single_buffer)]
            return pl.pallas_call(
                _supcon_labels_kernel, out_shape=out_shape, grid=(num_tiles,),
                in_specs=in_specs, out_specs=out_spec, compiler_params=cparams,
            )(anchor, contrastT, labels_row, labels_col)
        in_specs = [anchor_spec, contrast_spec,
                    pl.BlockSpec((TQ, B), lambda i: (i, 0))]
        return pl.pallas_call(
            _supcon_mask_kernel, out_shape=out_shape, grid=(num_tiles,),
            in_specs=in_specs, out_specs=out_spec, compiler_params=cparams,
        )(anchor, contrastT, mask_i8)

    try:
        partials = _call(True)
    except Exception:
        # Fallback in case single-buffering via pl.Buffered(1) is unsupported.
        partials = _call(False)

    total = jnp.sum(partials[:, 0, 0])
    return -(temperature / base_temperature) * total / B


if __name__ == "__main__":
    B, D = 8, 32
    key = jax.random.PRNGKey(0)
    kf, kl = jax.random.split(key)
    features = jax.random.normal(kf, (B, D), dtype=jnp.float32)
    labels = jax.random.randint(kl, (B,), 0, 4, dtype=jnp.int32)

    # Supervised path (labels -> in-kernel mask).
    loss = supcon_loss(features, labels=labels,
                       temperature=0.1, base_temperature=0.07)
    jax.block_until_ready(loss)

    # Unsupervised (SimCLR-degenerate) path: labels=None, mask=None.
    loss_unsup = supcon_loss(features, temperature=0.1, base_temperature=0.07)
    jax.block_until_ready(loss_unsup)

    # Explicit user-supplied mask path.
    user_mask = (labels.reshape(-1, 1) == labels.reshape(1, -1)).astype(jnp.float32)
    loss_mask = supcon_loss(features, mask=user_mask,
                            temperature=0.1, base_temperature=0.07)
    jax.block_until_ready(loss_mask)

    print("KERNEL_OK")
</pallas_src>

<mosaic_0001>
module attributes {stable_mosaic.version = 11 : i64} {
  func.func @_supcon_labels_kernel(%arg0: i32, %arg1: memref<8x128xbf16, #tpu.memory_space<vmem>>, %arg2: memref<128x8xbf16, #tpu.memory_space<vmem>>, %arg3: memref<8x1xi32, #tpu.memory_space<vmem>>, %arg4: memref<1x8xi32, #tpu.memory_space<vmem>>, %arg5: memref<1x8x128xf32, #tpu.memory_space<vmem>>) attributes {dimension_semantics = [#tpu.dimension_semantics<parallel>], iteration_bounds = array<i64: 1>, scalar_prefetch = 0 : i64, scratch_operands = 0 : i64, tpu.core_type = #tpu.core_type<tc>, window_params = [{transform_indices = @transform_0, window_bounds = array<i64: 8, 128>}, {pipeline_mode = #tpu.pipeline_mode<synchronous>, transform_indices = @transform_1, window_bounds = array<i64: 128, 8>}, {transform_indices = @transform_2, window_bounds = array<i64: 8, 1>}, {pipeline_mode = #tpu.pipeline_mode<synchronous>, transform_indices = @transform_3, window_bounds = array<i64: 1, 8>}, {transform_indices = @transform_4, window_bounds = array<i64: 1, 8, 128>}]} {
    %c0 = arith.constant 0 : index
    %c0_0 = arith.constant 0 : index
    %0 = vector.load %arg3[%c0, %c0_0] : memref<8x1xi32, #tpu.memory_space<vmem>>, vector<8x1xi32>
    %c0_1 = arith.constant 0 : index
    %c0_2 = arith.constant 0 : index
    %1 = vector.load %arg4[%c0_1, %c0_2] : memref<1x8xi32, #tpu.memory_space<vmem>>, vector<1x8xi32>
    %2 = vector.broadcast %0 : vector<8x1xi32> to vector<8x8xi32>
    %3 = vector.broadcast %1 : vector<1x8xi32> to vector<8x8xi32>
    %4 = arith.cmpi eq, %2, %3 : vector<8x8xi32>
    %c8_i32 = arith.constant 8 : i32
    %5 = arith.muli %arg0, %c8_i32 : i32
    %c0_3 = arith.constant 0 : index
    %c0_4 = arith.constant 0 : index
    %6 = vector.load %arg1[%c0_3, %c0_4] : memref<8x128xbf16, #tpu.memory_space<vmem>>, vector<8x128xbf16>
    %c0_5 = arith.constant 0 : index
    %c0_6 = arith.constant 0 : index
    %7 = vector.load %arg2[%c0_5, %c0_6] : memref<128x8xbf16, #tpu.memory_space<vmem>>, vector<128x8xbf16>
    %cst = arith.constant dense<0.000000e+00> : vector<8x8xf32>
    %8 = tpu.matmul %6, %7, %cst {dimension_numbers = #tpu.dot_dimension_numbers<[1], [0], [0], [1], [0, 0, 1, 1], [], []>} : vector<8x128xbf16>, vector<128x8xbf16>, vector<8x8xf32> -> vector<8x8xf32>
    %cst_7 = arith.constant dense<0xFF800000> : vector<8xf32>
    %9 = vector.multi_reduction <maximumf>, %8, %cst_7 [1] : vector<8x8xf32> to vector<8xf32>
    %10 = vector.shape_cast %9 : vector<8xf32> to vector<8x1xf32>
    %cst_8 = arith.constant dense<0x7F800000> : vector<8xf32>
    %11 = vector.multi_reduction <minimumf>, %8, %cst_8 [1] : vector<8x8xf32> to vector<8xf32>
    %12 = vector.shape_cast %11 : vector<8xf32> to vector<8x1xf32>
    %13 = tpu.iota {dimensions = array<i32: 0>} : vector<8x1xi32>
    %14 = vector.broadcast %5 : i32 to vector<8x1xi32>
    %15 = arith.addi %13, %14 : vector<8x1xi32>
    %c8_i32_9 = arith.constant 8 : i32
    %16 = vector.broadcast %c8_i32_9 : i32 to vector<8x1xi32>
    %17 = arith.cmpi slt, %15, %16 : vector<8x1xi32>
    %18 = arith.subf %10, %12 : vector<8x1xf32>
    %cst_10 = arith.constant 1.000000e+00 : f32
    %19 = vector.broadcast %cst_10 : f32 to vector<8x1xf32>
    %20 = arith.select %17, %18, %19 : vector<8x1xi1>, vector<8x1xf32>
    %21 = vector.broadcast %12 : vector<8x1xf32> to vector<8x8xf32>
    %22 = arith.subf %8, %21 : vector<8x8xf32>
    %cst_11 = arith.constant 1.000000e+00 : f32
    %23 = vector.broadcast %cst_11 : f32 to vector<8x1xf32>
    %24 = arith.divf %23, %20 : vector<8x1xf32>
    %25 = vector.broadcast %24 : vector<8x1xf32> to vector<8x8xf32>
    %26 = arith.mulf %22, %25 : vector<8x8xf32>
    %27 = tpu.iota {dimensions = array<i32: 0>} : vector<8x8xi32>
    %28 = vector.broadcast %5 : i32 to vector<8x8xi32>
    %29 = arith.addi %27, %28 : vector<8x8xi32>
    %30 = tpu.iota {dimensions = array<i32: 1>} : vector<8x8xi32>
    %31 = arith.cmpi ne, %29, %30 : vector<8x8xi32>
    %32 = arith.andi %4, %31 : vector<8x8xi1>
    %33 = math.exp %26 : vector<8x8xf32>
    %cst_12 = arith.constant 0.000000e+00 : f32
    %34 = vector.broadcast %cst_12 : f32 to vector<8x8xf32>
    %35 = arith.select %31, %33, %34 : vector<8x8xi1>, vector<8x8xf32>
    %cst_13 = arith.constant dense<0.000000e+00> : vector<8xf32>
    %36 = vector.multi_reduction <add>, %35, %cst_13 [1] : vector<8x8xf32> to vector<8xf32>
    %37 = vector.shape_cast %36 : vector<8xf32> to vector<8x1xf32>
    %38 = math.log %37 : vector<8x1xf32>
    %39 = vector.broadcast %38 : vector<8x1xf32> to vector<8x8xf32>
    %40 = arith.subf %26, %39 : vector<8x8xf32>
    %cst_14 = arith.constant 0.000000e+00 : f32
    %41 = vector.broadcast %cst_14 : f32 to vector<8x8xf32>
    %42 = arith.select %32, %40, %41 : vector<8x8xi1>, vector<8x8xf32>
    %cst_15 = arith.constant dense<0.000000e+00> : vector<8xf32>
    %43 = vector.multi_reduction <add>, %42, %cst_15 [1] : vector<8x8xf32> to vector<8xf32>
    %44 = vector.shape_cast %43 : vector<8xf32> to vector<8x1xf32>
    %cst_16 = arith.constant 1.000000e+00 : f32
    %cst_17 = arith.constant 0.000000e+00 : f32
    %45 = vector.broadcast %cst_16 : f32 to vector<8x8xf32>
    %46 = vector.broadcast %cst_17 : f32 to vector<8x8xf32>
    %47 = arith.select %32, %45, %46 : vector<8x8xi1>, vector<8x8xf32>
    %cst_18 = arith.constant dense<0.000000e+00> : vector<8xf32>
    %48 = vector.multi_reduction <add>, %47, %cst_18 [1] : vector<8x8xf32> to vector<8xf32>
    %49 = vector.shape_cast %48 : vector<8xf32> to vector<8x1xf32>
    %cst_19 = arith.constant 1.000000e+00 : f32
    %50 = vector.broadcast %cst_19 : f32 to vector<8x1xf32>
    %51 = arith.addf %49, %50 : vector<8x1xf32>
    %52 = arith.divf %44, %51 : vector<8x1xf32>
    %cst_20 = arith.constant 0.000000e+00 : f32
    %53 = vector.broadcast %cst_20 : f32 to vector<8x1xf32>
    %54 = arith.select %17, %52, %53 : vector<8x1xi1>, vector<8x1xf32>
    %55 = vector.shape_cast %54 : vector<8x1xf32> to vector<1x8x1xf32>
    %cst_21 = arith.constant dense<0.000000e+00> : vector<1xf32>
    %56 = vector.multi_reduction <add>, %55, %cst_21 [1, 2] : vector<1x8x1xf32> to vector<1xf32>
    %57 = vector.shape_cast %56 : vector<1xf32> to vector<1x1x1xf32>
    %58 = vector.extract %57[0, 0, 0] : f32 from vector<1x1x1xf32>
    %59 = vector.broadcast %58 : f32 to vector<1x8x128xf32>
    %c0_22 = arith.constant 0 : index
    %c0_23 = arith.constant 0 : index
    %c0_24 = arith.constant 0 : index
    %60 = vector.load %arg5[%c0_22, %c0_23, %c0_24] : memref<1x8x128xf32, #tpu.memory_space<vmem>>, vector<1x8x128xf32>
    tpu.vector_store %arg5[%c0_22, %c0_23, %c0_24], %59 {strides = array<i32>} : memref<1x8x128xf32, #tpu.memory_space<vmem>>, vector<1x8x128xf32>,
    return
  }
  func.func @transform_0(%arg0: i32) -> (i32, i32) {
    %c0_i32 = arith.constant 0 : i32
    %c0_i32_0 = arith.constant 0 : i32
    return %arg0, %c0_i32 : i32, i32
  }
  func.func @transform_1(%arg0: i32) -> (i32, i32) {
    %c0_i32 = arith.constant 0 : i32
    %c0_i32_0 = arith.constant 0 : i32
    %c0_i32_1 = arith.constant 0 : i32
    return %c0_i32, %c0_i32_0 : i32, i32
  }
  func.func @transform_2(%arg0: i32) -> (i32, i32) {
    %c0_i32 = arith.constant 0 : i32
    %c0_i32_0 = arith.constant 0 : i32
    return %arg0, %c0_i32 : i32, i32
  }
  func.func @transform_3(%arg0: i32) -> (i32, i32) {
    %c0_i32 = arith.constant 0 : i32
    %c0_i32_0 = arith.constant 0 : i32
    %c0_i32_1 = arith.constant 0 : i32
    return %c0_i32, %c0_i32_0 : i32, i32
  }
  func.func @transform_4(%arg0: i32) -> (i32, i32, i32) {
    %c0_i32 = arith.constant 0 : i32
    %c0_i32_0 = arith.constant 0 : i32
    %c0_i32_1 = arith.constant 0 : i32
    return %arg0, %c0_i32, %c0_i32_0 : i32, i32, i32
  }
}

module attributes {stable_mosaic.version = 11 : i64} {
  func.func @_supcon_labels_kernel(%arg0: i32, %arg1: memref<8x128xbf16, #tpu.memory_space<vmem>>, %arg2: memref<128x8xbf16, #tpu.memory_space<vmem>>, %arg3: memref<8x1xi32, #tpu.memory_space<vmem>>, %arg4: memref<1x8xi32, #tpu.memory_space<vmem>>, %arg5: memref<1x8x128xf32, #tpu.memory_space<vmem>>) attributes {dimension_semantics = [#tpu.dimension_semantics<parallel>], iteration_bounds = array<i64: 1>, scalar_prefetch = 0 : i64, scratch_operands = 0 : i64, tpu.core_type = #tpu.core_type<tc>, window_params = [{transform_indices = @transform_0, window_bounds = array<i64: 8, 128>}, {pipeline_mode = #tpu.pipeline_mode<synchronous>, transform_indices = @transform_1, window_bounds = array<i64: 128, 8>}, {transform_indices = @transform_2, window_bounds = array<i64: 8, 1>}, {pipeline_mode = #tpu.pipeline_mode<synchronous>, transform_indices = @transform_3, window_bounds = array<i64: 1, 8>}, {transform_indices = @transform_4, window_bounds = array<i64: 1, 8, 128>}]} {
    %c0 = arith.constant 0 : index
    %c0_0 = arith.constant 0 : index
    %0 = vector.load %arg3[%c0, %c0_0] : memref<8x1xi32, #tpu.memory_space<vmem>>, vector<8x1xi32>
    %c0_1 = arith.constant 0 : index
    %c0_2 = arith.constant 0 : index
    %1 = vector.load %arg4[%c0_1, %c0_2] : memref<1x8xi32, #tpu.memory_space<vmem>>, vector<1x8xi32>
    %2 = vector.broadcast %0 : vector<8x1xi32> to vector<8x8xi32>
    %3 = vector.broadcast %1 : vector<1x8xi32> to vector<8x8xi32>
    %4 = arith.cmpi eq, %2, %3 : vector<8x8xi32>
    %c8_i32 = arith.constant 8 : i32
    %5 = arith.muli %arg0, %c8_i32 : i32
    %c0_3 = arith.constant 0 : index
    %c0_4 = arith.constant 0 : index
    %6 = vector.load %arg1[%c0_3, %c0_4] : memref<8x128xbf16, #tpu.memory_space<vmem>>, vector<8x128xbf16>
    %c0_5 = arith.constant 0 : index
    %c0_6 = arith.constant 0 : index
    %7 = vector.load %arg2[%c0_5, %c0_6] : memref<128x8xbf16, #tpu.memory_space<vmem>>, vector<128x8xbf16>
    %cst = arith.constant dense<0.000000e+00> : vector<8x8xf32>
    %8 = tpu.matmul %6, %7, %cst {dimension_numbers = #tpu.dot_dimension_numbers<[1], [0], [0], [1], [0, 0, 1, 1], [], []>} : vector<8x128xbf16>, vector<128x8xbf16>, vector<8x8xf32> -> vector<8x8xf32>
    %cst_7 = arith.constant dense<0xFF800000> : vector<8xf32>
    %9 = vector.multi_reduction <maximumf>, %8, %cst_7 [1] : vector<8x8xf32> to vector<8xf32>
    %10 = vector.shape_cast %9 : vector<8xf32> to vector<8x1xf32>
    %cst_8 = arith.constant dense<0x7F800000> : vector<8xf32>
    %11 = vector.multi_reduction <minimumf>, %8, %cst_8 [1] : vector<8x8xf32> to vector<8xf32>
    %12 = vector.shape_cast %11 : vector<8xf32> to vector<8x1xf32>
    %13 = tpu.iota {dimensions = array<i32: 0>} : vector<8x1xi32>
    %14 = vector.broadcast %5 : i32 to vector<8x1xi32>
    %15 = arith.addi %13, %14 : vector<8x1xi32>
    %c8_i32_9 = arith.constant 8 : i32
    %16 = vector.broadcast %c8_i32_9 : i32 to vector<8x1xi32>
    %17 = arith.cmpi slt, %15, %16 : vector<8x1xi32>
    %18 = arith.subf %10, %12 : vector<8x1xf32>
    %cst_10 = arith.constant 1.000000e+00 : f32
    %19 = vector.broadcast %cst_10 : f32 to vector<8x1xf32>
    %20 = arith.select %17, %18, %19 : vector<8x1xi1>, vector<8x1xf32>
    %21 = vector.broadcast %12 : vector<8x1xf32> to vector<8x8xf32>
    %22 = arith.subf %8, %21 : vector<8x8xf32>
    %cst_11 = arith.constant 1.000000e+00 : f32
    %23 = vector.broadcast %cst_11 : f32 to vector<8x1xf32>
    %24 = arith.divf %23, %20 : vector<8x1xf32>
    %25 = vector.broadcast %24 : vector<8x1xf32> to vector<8x8xf32>
    %26 = arith.mulf %22, %25 : vector<8x8xf32>
    %27 = tpu.iota {dimensions = array<i32: 0>} : vector<8x8xi32>
    %28 = vector.broadcast %5 : i32 to vector<8x8xi32>
    %29 = arith.addi %27, %28 : vector<8x8xi32>
    %30 = tpu.iota {dimensions = array<i32: 1>} : vector<8x8xi32>
    %31 = arith.cmpi ne, %29, %30 : vector<8x8xi32>
    %32 = arith.andi %4, %31 : vector<8x8xi1>
    %33 = math.exp %26 : vector<8x8xf32>
    %cst_12 = arith.constant 0.000000e+00 : f32
    %34 = vector.broadcast %cst_12 : f32 to vector<8x8xf32>
    %35 = arith.select %31, %33, %34 : vector<8x8xi1>, vector<8x8xf32>
    %cst_13 = arith.constant dense<0.000000e+00> : vector<8xf32>
    %36 = vector.multi_reduction <add>, %35, %cst_13 [1] : vector<8x8xf32> to vector<8xf32>
    %37 = vector.shape_cast %36 : vector<8xf32> to vector<8x1xf32>
    %38 = math.log %37 : vector<8x1xf32>
    %39 = vector.broadcast %38 : vector<8x1xf32> to vector<8x8xf32>
    %40 = arith.subf %26, %39 : vector<8x8xf32>
    %cst_14 = arith.constant 0.000000e+00 : f32
    %41 = vector.broadcast %cst_14 : f32 to vector<8x8xf32>
    %42 = arith.select %32, %40, %41 : vector<8x8xi1>, vector<8x8xf32>
    %cst_15 = arith.constant dense<0.000000e+00> : vector<8xf32>
    %43 = vector.multi_reduction <add>, %42, %cst_15 [1] : vector<8x8xf32> to vector<8xf32>
    %44 = vector.shape_cast %43 : vector<8xf32> to vector<8x1xf32>
    %cst_16 = arith.constant 1.000000e+00 : f32
    %cst_17 = arith.constant 0.000000e+00 : f32
    %45 = vector.broadcast %cst_16 : f32 to vector<8x8xf32>
    %46 = vector.broadcast %cst_17 : f32 to vector<8x8xf32>
    %47 = arith.select %32, %45, %46 : vector<8x8xi1>, vector<8x8xf32>
    %cst_18 = arith.constant dense<0.000000e+00> : vector<8xf32>
    %48 = vector.multi_reduction <add>, %47, %cst_18 [1] : vector<8x8xf32> to vector<8xf32>
    %49 = vector.shape_cast %48 : vector<8xf32> to vector<8x1xf32>
    %cst_19 = arith.constant 1.000000e+00 : f32
    %50 = vector.broadcast %cst_19 : f32 to vector<8x1xf32>
    %51 = arith.addf %49, %50 : vector<8x1xf32>
    %52 = arith.divf %44, %51 : vector<8x1xf32>
    %cst_20 = arith.constant 0.000000e+00 : f32
    %53 = vector.broadcast %cst_20 : f32 to vector<8x1xf32>
    %54 = arith.select %17, %52, %53 : vector<8x1xi1>, vector<8x1xf32>
    %55 = vector.shape_cast %54 : vector<8x1xf32> to vector<1x8x1xf32>
    %cst_21 = arith.constant dense<0.000000e+00> : vector<1xf32>
    %56 = vector.multi_reduction <add>, %55, %cst_21 [1, 2] : vector<1x8x1xf32> to vector<1xf32>
    %57 = vector.shape_cast %56 : vector<1xf32> to vector<1x1x1xf32>
    %58 = vector.extract %57[0, 0, 0] : f32 from vector<1x1x1xf32>
    %59 = vector.broadcast %58 : f32 to vector<1x8x128xf32>
    %c0_22 = arith.constant 0 : index
    %c0_23 = arith.constant 0 : index
    %c0_24 = arith.constant 0 : index
    %60 = vector.load %arg5[%c0_22, %c0_23, %c0_24] : memref<1x8x128xf32, #tpu.memory_space<vmem>>, vector<1x8x128xf32>
    tpu.vector_store %arg5[%c0_22, %c0_23, %c0_24], %59 {strides = array<i32>} : memref<1x8x128xf32, #tpu.memory_space<vmem>>, vector<1x8x128xf32>,
    return
  }
  func.func @transform_0(%arg0: i32) -> (i32, i32) {
    %c0_i32 = arith.constant 0 : i32
    %c0_i32_0 = arith.constant 0 : i32
    return %arg0, %c0_i32 : i32, i32
  }
  func.func @transform_1(%arg0: i32) -> (i32, i32) {
    %c0_i32 = arith.constant 0 : i32
    %c0_i32_0 = arith.constant 0 : i32
    %c0_i32_1 = arith.constant 0 : i32
    return %c0_i32, %c0_i32_0 : i32, i32
  }
  func.func @transform_2(%arg0: i32) -> (i32, i32) {
    %c0_i32 = arith.constant 0 : i32
    %c0_i32_0 = arith.constant 0 : i32
    return %arg0, %c0_i32 : i32, i32
  }
  func.func @transform_3(%arg0: i32) -> (i32, i32) {
    %c0_i32 = arith.constant 0 : i32
    %c0_i32_0 = arith.constant 0 : i32
    %c0_i32_1 = arith.constant 0 : i32
    return %c0_i32, %c0_i32_0 : i32, i32
  }
  func.func @transform_4(%arg0: i32) -> (i32, i32, i32) {
    %c0_i32 = arith.constant 0 : i32
    %c0_i32_0 = arith.constant 0 : i32
    %c0_i32_1 = arith.constant 0 : i32
    return %arg0, %c0_i32, %c0_i32_0 : i32, i32, i32
  }
}

</mosaic_0001>

<bundles_post_ra>
// kernel: tpu_custom_call.1
= control target key start
LH: loop header
LB: loop body
LE: loop exit
PB: predicated region body
PF: predicated region fallthrough
CT: control target
= control target key end

     0   :  { %s363_s0 = inlined_call_operand.vmem [shape: bf16[8,128], index: 0, kind: input, shape index: {}]   ;;  %s364_s1 = inlined_call_operand.vmem [shape: bf16[128,8], index: 1, kind: input, shape index: {}]   ;;  %s365_s2 = inlined_call_operand.vmem [shape: s32[8,1], index: 2, kind: input, shape index: {}]   ;;  %s366_s3 = inlined_call_operand.vmem [shape: s32[1,8], index: 3, kind: input, shape index: {}]   ;;  %s367_s4 = inlined_call_operand.hbm [shape: f32[1,8,128], index: 4, kind: output, shape index: {}]  }
   0x1   :  { %v241_v0 = vld [vmem:[%s364_s1 + $0x38] sm:$0xff]  ;;  %v240_v1 = vld [vmem:[%s364_s1 + $0x30] sm:$0xff] }
   0x2   :  { %91 = vmatpush.bf16.msra.mxu0 %v241_v0 }
   0x3   :  { %9 = vsyncpa [#allocation3], 0  ;;  %v239_v2 = vld [vmem:[%s364_s1 + $0x28] sm:$0xff]  ;;  %v238_v3 = vld [vmem:[%s364_s1 + $0x20] sm:$0xff]  ;;  %v284_v10 = vmov 0   ;;  %vm104_vm0 = vcmask 64512   ;;  %v111_v16 = vlaneseq }
   0x4   :  { %v237_v4 = vld [vmem:[%s364_s1 + $0x18] sm:$0xff]  ;;  %v236_v5 = vld [vmem:[%s364_s1 + $0x10] sm:$0xff]  ;;  %v235_v6 = vld [vmem:[%s364_s1 + $0x8] sm:$0xff]  ;;  %247 = vset.pattern.permute.xlu1 %v284_v10  ;;  %248 = vset.pattern.permute.xlu0 %v284_v10  ;;  %v285_v24 = vmov 0.0   ;;  %vm173_vm12 = vcmask 7168   ;;  %s193_s11 = sshll.u32 %s367_s4, 4  ;;  %s194_s11 = int_to_ptr.hbm [resolvable:$true] %s193_s11 }
   0x5   :  { %v234_v7 = vld [vmem:[%s364_s1] sm:$0xff]  ;;  %v112_v18 = vshrl.u32 %v111_v16, 7  ;;  %v136_v19 = vand.u32 127, %v111_v16 }
   0x6   :  { %92 = vmatpush.bf16.msra.mxu0 %v240_v1  ;;  %v26_v8 = vld [vmem:[%s363_s0] sm:$0xf] }
   0x7   :  { %v18_v9 = vld [vmem:[%s365_s2] sm:$0xff]  ;;  %vm137_vm1 = vcmp.ne.s32.totalorder %v112_v18, %v136_v19  ;;  %s286_s2 = smov [#allocation2]  }
   0x8   :  { %21 = vperm.xlu1 %247, %v18_v9   ;;  %v249_v21 = vld [vmem:[%s366_s3] ss:$0 sm:$0xff]  ;;  %s191_s3 = sshll.u32 %s286_s2, 4  ;;  %s192_s3 = int_to_ptr.vmem [resolvable:$true] %s191_s3 }
   0xa   :  { %93 = vmatpush.bf16.msra.mxu0 %v239_v2 }
   0xe   :  { %94 = vmatpush.bf16.msra.mxu0 %v238_v3 }
  0x12   :  { %95 = vmatpush.bf16.msra.mxu0 %v237_v4 }
  0x16   :  { %96 = vmatpush.bf16.msra.mxu0 %v236_v5 }
  0x1a   :  { %97 = vmatpush.bf16.msra.mxu0 %v235_v6 }
  0x1e   :  { %98 = vmatpush.bf16.msra.mxu0 %v234_v7 }
  0x21   :  { %99 = vmatmul.bf16.vlgmr.msra.gmra.mxu0 %v26_v8 }
  0x7a   :  { %v22_v22 = vpop.permute.xlu1 %21 }
  0x7b   :  { %vm24_vm2 = vcmp.eq.s32.totalorder %v22_v22, %v249_v21 }
  0x7c   :  { %vm348_vm3 = vmand %vm24_vm2, %vm137_vm1 }
  0x7d   :  { %v152_v25 = vsel %vm348_vm3, 1.0, %v285_v24 }
  0x7e   :  { %v153_v26 = vsel %vm104_vm0, %v152_v25, 0.0 }
  0x7f   :  { %154 = vadd.xlane.f32.xlu2 %v153_v26 }
  0x9e   :  { %v100_v11 = vpop.f32.mrf.mxu0 }
  0x9f   :  { %v105_v12 = vsel %vm104_vm0, %v100_v11, -inf  ;;  %v108_v14 = vsel %vm104_vm0, %v100_v11, inf }
  0xa0   :  { %106 = vmax.xlane.f32.xlu0 %v105_v12 }
  0xa6   :  { %v102_v13 = vpop.f32.mrf.mxu0 }
  0xa8   :  { %109 = vmin.xlane.f32.xlu0 %v108_v14 }
  0xf2   :  { %v155_v49 = vpop.xlane.xlu2 %154 }
  0xf3   :  { %v156_v50 = vadd.f32 1.0, %v155_v49 }
  0xf5   :  { %vm162_vm8 = vweird.f32 %v156_v50  ;;  %v168_v55 = vand.u32 2147483648, %v156_v50  ;;  %v166_v57 = vand.u32 2147483647, %v156_v50 }
  0xf7   :  { %v169_v58 = vor.u32 1.1754944e-38, %v168_v55  ;;  %vm167_vm11 = vcmp.eq.f32.partialorder %v166_v57, 8.507059e+37 }
 0x113   :  { %v107_v15 = vpop.xlane.xlu0 %106 }
 0x11b   :  { %v110_v17 = vpop.xlane.xlu0 %109 }
 0x11c   :  { %v116_v20 = vsub.f32 %v107_v15, %v110_v17  ;;  %v118_v35 = vsub.f32 %v100_v11, %v110_v17 }
 0x11e   :  { %250 = vrcp.f32 %v116_v20  ;;  %v130_v30 = vand.u32 2147483648, %v116_v20  ;;  %v128_v32 = vand.u32 2147483647, %v116_v20  ;;  %vm124_vm5 = vweird.f32 %v116_v20 }
 0x120   :  { %v131_v34 = vor.u32 1.1754944e-38, %v130_v30  ;;  %vm129_vm7 = vcmp.eq.f32.partialorder %v128_v32, 8.507059e+37 }
 0x124   :  { %v251_v27 = vpop.eup %250 }
 0x125   :  { %v120_v28 = vmul.f32 %v251_v27, %v116_v20  ;;  %vm125_vm4 = vweird.f32 %v251_v27 }
 0x126   :  { %vm126_vm6 = vmor %vm124_vm5, %vm125_vm4 }
 0x127   :  { %v121_v29 = vsub.f32 1.0, %v120_v28 }
 0x129   :  { %v122_v31 = vmul.f32 %v251_v27, %v121_v29 }
 0x12b   :  { %v123_v33 = vadd.f32 %v251_v27, %v122_v31 }
 0x12d   :  { %v127_v36 = vsel %vm126_vm6, %v251_v27, %v123_v33 }
 0x12e   :  { %v132_v37 = vsel %vm129_vm7, %v131_v34, %v127_v36 }
 0x12f   :  { %v134_v38 = vmul.f32 %v132_v37, %v118_v35 }
 0x131   :  { %v139_v39 = vmul.f32 1.442695, %v134_v38 }
 0x133   :  { %252 = vpow2.f32 %v139_v39 }
 0x139   :  { %v253_v40 = vpop.eup %252 }
 0x13a   :  { %v141_v41 = vsel %vm137_vm1, %v253_v40, 0.0 }
 0x13b   :  { %v142_v42 = vsel %vm104_vm0, %v141_v41, 0.0 }
 0x13c   :  { %143 = vadd.xlane.f32.xlu1 %v142_v42 }
 0x1af   :  { %v144_v43 = vpop.xlane.xlu1 %143 }
 0x1b0   :  { %254 = vlog2.f32 %v144_v43 }
 0x1b1   :  { %256 = vrcp.f32 %v156_v50 }
 0x1b6   :  { %v255_v44 = vpop.eup %254 }
 0x1b7   :  { %v146_v45 = vmul.f32 0.6931472, %v255_v44  ;;  %v257_v51 = vpop.eup %256 }
 0x1b8   :  { %v158_v52 = vmul.f32 %v257_v51, %v156_v50  ;;  %vm163_vm9 = vweird.f32 %v257_v51 }
 0x1b9   :  { %v147_v46 = vsub.f32 %v134_v38, %v146_v45  ;;  %vm164_vm10 = vmor %vm162_vm8, %vm163_vm9 }
 0x1ba   :  { %v159_v53 = vsub.f32 1.0, %v158_v52 }
 0x1bb   :  { %v148_v47 = vsel %vm348_vm3, %v147_v46, 0.0 }
 0x1bc   :  { %v149_v48 = vsel %vm104_vm0, %v148_v47, 0.0  ;;  %v160_v54 = vmul.f32 %v257_v51, %v159_v53 }
 0x1bd   :  { %150 = vadd.xlane.f32.xlu2 %v149_v48 }
 0x1be   :  { %v161_v56 = vadd.f32 %v257_v51, %v160_v54 }
 0x1c0   :  { %v165_v59 = vsel %vm164_vm10, %v257_v51, %v161_v56 }
 0x1c1   :  { %v170_v60 = vsel %vm167_vm11, %v169_v58, %v165_v59 }
 0x230   :  { %v151_v61 = vpop.xlane.xlu2 %150 }
 0x231   :  { %v171_v62 = vmul.f32 %v170_v60, %v151_v61 }
 0x233   :  { %v174_v63 = vsel %vm173_vm12, %v171_v62, 0.0 }
 0x234   :  { %175 = vadd.xlane.f32.xlu0 %v174_v63 }
 0x2a7   :  { %v176_v0 = vpop.xlane.xlu0 %175 }
 0x2a8   :  { %v177_v1 = vrot.slane %v176_v0, 4 }
 0x2aa   :  { %v178_v2 = vadd.f32 %v177_v1, %v176_v0 }
 0x2ac   :  { %v179_v3 = vrot.slane %v178_v2, 2 }
 0x2ae   :  { %v180_v4 = vadd.f32 %v179_v3, %v178_v2 }
 0x2b0   :  { %v181_v5 = vrot.slane %v180_v4, 1 }
 0x2b2   :  { %v182_v6 = vadd.f32 %v181_v5, %v180_v4 }
 0x2b4   :  { %242 = vpush %v182_v6 }
 0x2e5   :  { %s243_s12 = spop %242 }
 0x2e6   :  { %v184_v7 = vstv %s243_s12 }
 0x2e7   :  { %185 = vst [vmem:[#allocation2] sm:$0xff] %v184_v7 }
 0x2e8   :  { %196 = dma.vmem_to_hbm [thread:$0]  %s192_s3, 128, %s194_s11, [#allocation3]  }
 0x2e9   :  { %282 = dma.done.wait [#allocation3], 128  }
 0x2ea   :  { %283 = vsyncadd [#allocation3], 4294967168 }
 0x2eb   :  { %201 = vsyncpa [#allocation3], 1 }

// kernel: tpu_custom_call.1
= control target key start
LH: loop header
LB: loop body
LE: loop exit
PB: predicated region body
PF: predicated region fallthrough
CT: control target
= control target key end

     0   :  { %s363_s0 = inlined_call_operand.vmem [shape: bf16[8,128], index: 0, kind: input, shape index: {}]   ;;  %s364_s1 = inlined_call_operand.vmem [shape: bf16[128,8], index: 1, kind: input, shape index: {}]   ;;  %s365_s2 = inlined_call_operand.vmem [shape: s32[8,1], index: 2, kind: input, shape index: {}]   ;;  %s366_s3 = inlined_call_operand.vmem [shape: s32[1,8], index: 3, kind: input, shape index: {}]   ;;  %s367_s4 = inlined_call_operand.hbm [shape: f32[1,8,128], index: 4, kind: output, shape index: {}]  }
   0x1   :  { %v241_v0 = vld [vmem:[%s364_s1 + $0x38] sm:$0xff]  ;;  %v240_v1 = vld [vmem:[%s364_s1 + $0x30] sm:$0xff] }
   0x2   :  { %91 = vmatpush.bf16.msra.mxu0 %v241_v0 }
   0x3   :  { %9 = vsyncpa [#allocation3], 0  ;;  %v239_v2 = vld [vmem:[%s364_s1 + $0x28] sm:$0xff]  ;;  %v238_v3 = vld [vmem:[%s364_s1 + $0x20] sm:$0xff]  ;;  %v284_v10 = vmov 0   ;;  %vm104_vm0 = vcmask 64512   ;;  %v111_v16 = vlaneseq }
   0x4   :  { %v237_v4 = vld [vmem:[%s364_s1 + $0x18] sm:$0xff]  ;;  %v236_v5 = vld [vmem:[%s364_s1 + $0x10] sm:$0xff]  ;;  %v235_v6 = vld [vmem:[%s364_s1 + $0x8] sm:$0xff]  ;;  %247 = vset.pattern.permute.xlu1 %v284_v10  ;;  %248 = vset.pattern.permute.xlu0 %v284_v10  ;;  %v285_v24 = vmov 0.0   ;;  %vm173_vm12 = vcmask 7168   ;;  %s193_s11 = sshll.u32 %s367_s4, 4  ;;  %s194_s11 = int_to_ptr.hbm [resolvable:$true] %s193_s11 }
   0x5   :  { %v234_v7 = vld [vmem:[%s364_s1] sm:$0xff]  ;;  %v112_v18 = vshrl.u32 %v111_v16, 7  ;;  %v136_v19 = vand.u32 127, %v111_v16 }
   0x6   :  { %92 = vmatpush.bf16.msra.mxu0 %v240_v1  ;;  %v26_v8 = vld [vmem:[%s363_s0] sm:$0xf] }
   0x7   :  { %v18_v9 = vld [vmem:[%s365_s2] sm:$0xff]  ;;  %vm137_vm1 = vcmp.ne.s32.totalorder %v112_v18, %v136_v19  ;;  %s286_s2 = smov [#allocation2]  }
   0x8   :  { %21 = vperm.xlu1 %247, %v18_v9   ;;  %v249_v21 = vld [vmem:[%s366_s3] ss:$0 sm:$0xff]  ;;  %s191_s3 = sshll.u32 %s286_s2, 4  ;;  %s192_s3 = int_to_ptr.vmem [resolvable:$true] %s191_s3 }
   0xa   :  { %93 = vmatpush.bf16.msra.mxu0 %v239_v2 }
   0xe   :  { %94 = vmatpush.bf16.msra.mxu0 %v238_v3 }
  0x12   :  { %95 = vmatpush.bf16.msra.mxu0 %v237_v4 }
  0x16   :  { %96 = vmatpush.bf16.msra.mxu0 %v236_v5 }
  0x1a   :  { %97 = vmatpush.bf16.msra.mxu0 %v235_v6 }
  0x1e   :  { %98 = vmatpush.bf16.msra.mxu0 %v234_v7 }
  0x21   :  { %99 = vmatmul.bf16.vlgmr.msra.gmra.mxu0 %v26_v8 }
  0x7a   :  { %v22_v22 = vpop.permute.xlu1 %21 }
  0x7b   :  { %vm24_vm2 = vcmp.eq.s32.totalorder %v22_v22, %v249_v21 }
  0x7c   :  { %vm348_vm3 = vmand %vm24_vm2, %vm137_vm1 }
  0x7d   :  { %v152_v25 = vsel %vm348_vm3, 1.0, %v285_v24 }
  0x7e   :  { %v153_v26 = vsel %vm104_vm0, %v152_v25, 0.0 }
  0x7f   :  { %154 = vadd.xlane.f32.xlu2 %v153_v26 }
  0x9e   :  { %v100_v11 = vpop.f32.mrf.mxu0 }
  0x9f   :  { %v105_v12 = vsel %vm104_vm0, %v100_v11, -inf  ;;  %v108_v14 = vsel %vm104_vm0, %v100_v11, inf }
  0xa0   :  { %106 = vmax.xlane.f32.xlu0 %v105_v12 }
  0xa6   :  { %v102_v13 = vpop.f32.mrf.mxu0 }
  0xa8   :  { %109 = vmin.xlane.f32.xlu0 %v108_v14 }
  0xf2   :  { %v155_v49 = vpop.xlane.xlu2 %154 }
  0xf3   :  { %v156_v50 = vadd.f32 1.0, %v155_v49 }
  0xf5   :  { %vm162_vm8 = vweird.f32 %v156_v50  ;;  %v168_v55 = vand.u32 2147483648, %v156_v50  ;;  %v166_v57 = vand.u32 2147483647, %v156_v50 }
  0xf7   :  { %v169_v58 = vor.u32 1.1754944e-38, %v168_v55  ;;  %vm167_vm11 = vcmp.eq.f32.partialorder %v166_v57, 8.507059e+37 }
 0x113   :  { %v107_v15 = vpop.xlane.xlu0 %106 }
 0x11b   :  { %v110_v17 = vpop.xlane.xlu0 %109 }
 0x11c   :  { %v116_v20 = vsub.f32 %v107_v15, %v110_v17  ;;  %v118_v35 = vsub.f32 %v100_v11, %v110_v17 }
 0x11e   :  { %250 = vrcp.f32 %v116_v20  ;;  %v130_v30 = vand.u32 2147483648, %v116_v20  ;;  %v128_v32 = vand.u32 2147483647, %v116_v20  ;;  %vm124_vm5 = vweird.f32 %v116_v20 }
 0x120   :  { %v131_v34 = vor.u32 1.1754944e-38, %v130_v30  ;;  %vm129_vm7 = vcmp.eq.f32.partialorder %v128_v32, 8.507059e+37 }
 0x124   :  { %v251_v27 = vpop.eup %250 }
 0x125   :  { %v120_v28 = vmul.f32 %v251_v27, %v116_v20  ;;  %vm125_vm4 = vweird.f32 %v251_v27 }
 0x126   :  { %vm126_vm6 = vmor %vm124_vm5, %vm125_vm4 }
 0x127   :  { %v121_v29 = vsub.f32 1.0, %v120_v28 }
 0x129   :  { %v122_v31 = vmul.f32 %v251_v27, %v121_v29 }
 0x12b   :  { %v123_v33 = vadd.f32 %v251_v27, %v122_v31 }
 0x12d   :  { %v127_v36 = vsel %vm126_vm6, %v251_v27, %v123_v33 }
 0x12e   :  { %v132_v37 = vsel %vm129_vm7, %v131_v34, %v127_v36 }
 0x12f   :  { %v134_v38 = vmul.f32 %v132_v37, %v118_v35 }
 0x131   :  { %v139_v39 = vmul.f32 1.442695, %v134_v38 }
 0x133   :  { %252 = vpow2.f32 %v139_v39 }
 0x139   :  { %v253_v40 = vpop.eup %252 }
 0x13a   :  { %v141_v41 = vsel %vm137_vm1, %v253_v40, 0.0 }
 0x13b   :  { %v142_v42 = vsel %vm104_vm0, %v141_v41, 0.0 }
 0x13c   :  { %143 = vadd.xlane.f32.xlu1 %v142_v42 }
 0x1af   :  { %v144_v43 = vpop.xlane.xlu1 %143 }
 0x1b0   :  { %254 = vlog2.f32 %v144_v43 }
 0x1b1   :  { %256 = vrcp.f32 %v156_v50 }
 0x1b6   :  { %v255_v44 = vpop.eup %254 }
 0x1b7   :  { %v146_v45 = vmul.f32 0.6931472, %v255_v44  ;;  %v257_v51 = vpop.eup %256 }
 0x1b8   :  { %v158_v52 = vmul.f32 %v257_v51, %v156_v50  ;;  %vm163_vm9 = vweird.f32 %v257_v51 }
 0x1b9   :  { %v147_v46 = vsub.f32 %v134_v38, %v146_v45  ;;  %vm164_vm10 = vmor %vm162_vm8, %vm163_vm9 }
 0x1ba   :  { %v159_v53 = vsub.f32 1.0, %v158_v52 }
 0x1bb   :  { %v148_v47 = vsel %vm348_vm3, %v147_v46, 0.0 }
 0x1bc   :  { %v149_v48 = vsel %vm104_vm0, %v148_v47, 0.0  ;;  %v160_v54 = vmul.f32 %v257_v51, %v159_v53 }
 0x1bd   :  { %150 = vadd.xlane.f32.xlu2 %v149_v48 }
 0x1be   :  { %v161_v56 = vadd.f32 %v257_v51, %v160_v54 }
 0x1c0   :  { %v165_v59 = vsel %vm164_vm10, %v257_v51, %v161_v56 }
 0x1c1   :  { %v170_v60 = vsel %vm167_vm11, %v169_v58, %v165_v59 }
 0x230   :  { %v151_v61 = vpop.xlane.xlu2 %150 }
 0x231   :  { %v171_v62 = vmul.f32 %v170_v60, %v151_v61 }
 0x233   :  { %v174_v63 = vsel %vm173_vm12, %v171_v62, 0.0 }
 0x234   :  { %175 = vadd.xlane.f32.xlu0 %v174_v63 }
 0x2a7   :  { %v176_v0 = vpop.xlane.xlu0 %175 }
 0x2a8   :  { %v177_v1 = vrot.slane %v176_v0, 4 }
 0x2aa   :  { %v178_v2 = vadd.f32 %v177_v1, %v176_v0 }
 0x2ac   :  { %v179_v3 = vrot.slane %v178_v2, 2 }
 0x2ae   :  { %v180_v4 = vadd.f32 %v179_v3, %v178_v2 }
 0x2b0   :  { %v181_v5 = vrot.slane %v180_v4, 1 }
 0x2b2   :  { %v182_v6 = vadd.f32 %v181_v5, %v180_v4 }
 0x2b4   :  { %242 = vpush %v182_v6 }
 0x2e5   :  { %s243_s12 = spop %242 }
 0x2e6   :  { %v184_v7 = vstv %s243_s12 }
 0x2e7   :  { %185 = vst [vmem:[#allocation2] sm:$0xff] %v184_v7 }
 0x2e8   :  { %196 = dma.vmem_to_hbm [thread:$0]  %s192_s3, 128, %s194_s11, [#allocation3]  }
 0x2e9   :  { %282 = dma.done.wait [#allocation3], 128  }
 0x2ea   :  { %283 = vsyncadd [#allocation3], 4294967168 }
 0x2eb   :  { %201 = vsyncpa [#allocation3], 1 }

</bundles_post_ra>
